<compile_context>
chip_gen: v7x
topology: tpu7x:2x2x1
jax: 0.10.0
libtpu: 0.0.40
codegen_flags: <defaults>
</compile_context>

<pallas_src>
import functools

import jax
import jax.numpy as jnp
from jax.experimental import pallas as pl
from jax.experimental.pallas import tpu as pltpu


def _linear_tanh_kernel(x_ref, w_ref, b_ref, o_ref, acc_ref):
    # x_ref: (tm, tk), w_ref: (tk, tn), b_ref: (1, tn),
    # o_ref: (tm, tn),  acc_ref: (tm, tn) f32 scratch (resident across K).
    k = pl.program_id(2)

    @pl.when(k == 0)
    def _init():
        acc_ref[...] = jnp.zeros_like(acc_ref)

    acc_ref[...] += jnp.dot(
        x_ref[...], w_ref[...], preferred_element_type=jnp.float32
    )

    @pl.when(k == pl.num_programs(2) - 1)
    def _epilogue():
        # Bias broadcast + tanh done once per output tile, in f32, then cast.
        # tanh lowers to the EUP slot -> essentially free when MXU-bound.
        o_ref[...] = jnp.tanh(acc_ref[...] + b_ref[...]).astype(o_ref.dtype)


def _round_up(a, m):
    return ((a + m - 1) // m) * m


@functools.partial(jax.jit, static_argnames=("tm", "tn", "tk"))
def linear_tanh(x, w_t, b, *, tm=128, tn=128, tk=256):
    """y = tanh(x @ w_t + b).  x: (B, In), w_t: (In, Out), b: (Out,).

    Tile defaults (128/128/256) are 128-aligned so they map cleanly onto the
    v5e 4x128x128 MXU and are fine (if sub-optimal-but-small) on the
    v6e/v7x 2x256x256 MXU; for large layers on v6e/v7x pass tm=tn=256,
    tk=512 and (optionally) bf16 inputs.
    """
    B, In = x.shape
    In2, Out = w_t.shape
    assert In == In2, (In, In2)
    assert b.shape == (Out,), b.shape

    # Pad every dim up to a tile multiple so all BlockSpec tiles are
    # (8,128)-aligned and the output store is lane-dense. Zero padding in
    # x-cols / w-rows adds 0 to the accumulator; padded output is discarded.
    Bp, Inp, Outp = _round_up(B, tm), _round_up(In, tk), _round_up(Out, tn)
    xp = jnp.pad(x, ((0, Bp - B), (0, Inp - In))) if (Bp, Inp) != (B, In) else x
    wp = (
        jnp.pad(w_t, ((0, Inp - In), (0, Outp - Out)))
        if (Inp, Outp) != (In, Out)
        else w_t
    )
    bp = jnp.pad(b, (0, Outp - Out)).reshape(1, Outp)

    grid = (Bp // tm, Outp // tn, Inp // tk)

    out_padded = pl.pallas_call(
        _linear_tanh_kernel,
        out_shape=jax.ShapeDtypeStruct((Bp, Outp), x.dtype),
        grid_spec=pltpu.PrefetchScalarGridSpec(
            num_scalar_prefetch=0,
            grid=grid,
            in_specs=[
                pl.BlockSpec((tm, tk), lambda i, j, k: (i, k)),   # x tile
                pl.BlockSpec((tk, tn), lambda i, j, k: (k, j)),   # w tile
                pl.BlockSpec((1, tn), lambda i, j, k: (0, j)),    # bias (resident over K)
            ],
            out_specs=pl.BlockSpec((tm, tn), lambda i, j, k: (i, j)),
            scratch_shapes=[pltpu.VMEM((tm, tn), jnp.float32)],
        ),
        compiler_params=pltpu.CompilerParams(
            dimension_semantics=("parallel", "parallel", "arbitrary"),
            # Explicit headroom: tiles here are tiny, but larger (256/512)
            # tiles with double-buffered inputs stay well under this on
            # v5e/v6e/v7x.
            vmem_limit_bytes=48 * 1024 * 1024,
        ),
    )(xp, wp, bp)

    if (Bp, Outp) != (B, Out):
        return out_padded[:B, :Out]
    return out_padded


def make_params(key, in_channel, out_channel, dtype=jnp.float32):
    """Orthogonal weight init (gain=1.0), zero bias — matches
    orthogonal_init(self.fc) in the PyTorch module."""
    # PyTorch Linear weight shape: (out, in); orthogonal_ on that shape.
    w = jax.nn.initializers.orthogonal(scale=1.0)(
        key, (out_channel, in_channel), dtype
    )
    b = jnp.zeros((out_channel,), dtype)
    # Pre-transpose for the kernel: (in, out).
    return w.T, b


if __name__ == "__main__":
    key = jax.random.PRNGKey(0)
    k_x, k_w = jax.random.split(key)

    # Small shapes consistent with the module's forward (batch, in) -> (batch, out).
    batch, in_channel, out_channel = 8, 32, 32
    x = jax.random.normal(k_x, (batch, in_channel), dtype=jnp.float32)
    w_t, b = make_params(k_w, in_channel, out_channel)

    y = linear_tanh(x, w_t, b)
    jax.block_until_ready(y)

    # Reference check in plain JAX.
    y_ref = jnp.tanh(x @ w_t + b)
    assert y.shape == (batch, out_channel)
    assert jnp.allclose(y, y_ref, atol=1e-5), "mismatch vs reference"

    # NOTE: at this toy 8x32x32 size the pallas_call itself is launch-overhead
    # dominated; the tiling above is what makes it scale to real layer sizes.
    # TODO(synk): for production v6e/v7x, feed bf16 x/w_t (keep f32 accum) and
    # use tm=tn=256, tk=512 to better fill the 2x256x256 MXU.

    print("KERNEL_OK")
</pallas_src>

<mosaic_0001>
module attributes {stable_mosaic.version = 11 : i64} {
  func.func @_linear_tanh_kernel(%arg0: i32, %arg1: i32, %arg2: i32, %arg3: memref<128x256xf32, #tpu.memory_space<vmem>>, %arg4: memref<256x128xf32, #tpu.memory_space<vmem>>, %arg5: memref<1x128xf32, #tpu.memory_space<vmem>>, %arg6: memref<128x128xf32, #tpu.memory_space<vmem>>, %arg7: memref<128x128xf32, #tpu.memory_space<vmem>>) attributes {dimension_semantics = [#tpu.dimension_semantics<parallel>, #tpu.dimension_semantics<parallel>, #tpu.dimension_semantics<arbitrary>], iteration_bounds = array<i64: 1, 1, 1>, scalar_prefetch = 0 : i64, scratch_operands = 1 : i64, tpu.core_type = #tpu.core_type<tc>, window_params = [{transform_indices = @transform_0, window_bounds = array<i64: 128, 256>}, {transform_indices = @transform_1, window_bounds = array<i64: 256, 128>}, {transform_indices = @transform_2, window_bounds = array<i64: 1, 128>}, {transform_indices = @transform_3, window_bounds = array<i64: 128, 128>}]} {
    %c0_i32 = arith.constant 0 : i32
    %0 = arith.cmpi eq, %arg2, %c0_i32 : i32
    %1 = arith.extui %0 : i1 to i32
    %c0_i32_0 = arith.constant 0 : i32
    %2 = arith.cmpi ne, %1, %c0_i32_0 : i32
    scf.if %2 {
      %cst_10 = arith.constant 0.000000e+00 : f32
      %12 = vector.broadcast %cst_10 : f32 to vector<128x128xf32>
      %c0_11 = arith.constant 0 : index
      %c0_12 = arith.constant 0 : index
      %13 = vector.load %arg7[%c0_11, %c0_12] : memref<128x128xf32, #tpu.memory_space<vmem>>, vector<128x128xf32>
      tpu.vector_store %arg7[%c0_11, %c0_12], %12 {strides = array<i32>} : memref<128x128xf32, #tpu.memory_space<vmem>>, vector<128x128xf32>,
    } else {
    }
    %c0 = arith.constant 0 : index
    %c0_1 = arith.constant 0 : index
    %3 = vector.load %arg7[%c0, %c0_1] : memref<128x128xf32, #tpu.memory_space<vmem>>, vector<128x128xf32>
    %c0_2 = arith.constant 0 : index
    %c0_3 = arith.constant 0 : index
    %4 = vector.load %arg3[%c0_2, %c0_3] : memref<128x256xf32, #tpu.memory_space<vmem>>, vector<128x256xf32>
    %c0_4 = arith.constant 0 : index
    %c0_5 = arith.constant 0 : index
    %5 = vector.load %arg4[%c0_4, %c0_5] : memref<256x128xf32, #tpu.memory_space<vmem>>, vector<256x128xf32>
    %cst = arith.constant dense<0.000000e+00> : vector<128x128xf32>
    %6 = tpu.matmul %4, %5, %cst {dimension_numbers = #tpu.dot_dimension_numbers<[1], [0], [0], [1], [0, 0, 1, 1], [], []>} : vector<128x256xf32>, vector<256x128xf32>, vector<128x128xf32> -> vector<128x128xf32>
    %7 = arith.addf %3, %6 : vector<128x128xf32>
    %c0_6 = arith.constant 0 : index
    %c0_7 = arith.constant 0 : index
    %8 = vector.load %arg7[%c0_6, %c0_7] : memref<128x128xf32, #tpu.memory_space<vmem>>, vector<128x128xf32>
    tpu.vector_store %arg7[%c0_6, %c0_7], %7 {strides = array<i32>} : memref<128x128xf32, #tpu.memory_space<vmem>>, vector<128x128xf32>,
    %c0_i32_8 = arith.constant 0 : i32
    %9 = arith.cmpi eq, %arg2, %c0_i32_8 : i32
    %10 = arith.extui %9 : i1 to i32
    %c0_i32_9 = arith.constant 0 : i32
    %11 = arith.cmpi ne, %10, %c0_i32_9 : i32
    scf.if %11 {
      %c0_10 = arith.constant 0 : index
      %c0_11 = arith.constant 0 : index
      %12 = vector.load %arg7[%c0_10, %c0_11] : memref<128x128xf32, #tpu.memory_space<vmem>>, vector<128x128xf32>
      %c0_12 = arith.constant 0 : index
      %c0_13 = arith.constant 0 : index
      %13 = vector.load %arg5[%c0_12, %c0_13] : memref<1x128xf32, #tpu.memory_space<vmem>>, vector<1x128xf32>
      %14 = vector.broadcast %13 : vector<1x128xf32> to vector<128x128xf32>
      %15 = arith.addf %12, %14 : vector<128x128xf32>
      %16 = math.tanh %15 : vector<128x128xf32>
      %c0_14 = arith.constant 0 : index
      %c0_15 = arith.constant 0 : index
      %17 = vector.load %arg6[%c0_14, %c0_15] : memref<128x128xf32, #tpu.memory_space<vmem>>, vector<128x128xf32>
      tpu.vector_store %arg6[%c0_14, %c0_15], %16 {strides = array<i32>} : memref<128x128xf32, #tpu.memory_space<vmem>>, vector<128x128xf32>,
    } else {
    }
    return
  }
  func.func @transform_0(%arg0: i32, %arg1: i32, %arg2: i32) -> (i32, i32) {
    %c0_i32 = arith.constant 0 : i32
    return %arg0, %arg2 : i32, i32
  }
  func.func @transform_1(%arg0: i32, %arg1: i32, %arg2: i32) -> (i32, i32) {
    %c0_i32 = arith.constant 0 : i32
    return %arg2, %arg1 : i32, i32
  }
  func.func @transform_2(%arg0: i32, %arg1: i32, %arg2: i32) -> (i32, i32) {
    %c0_i32 = arith.constant 0 : i32
    %c0_i32_0 = arith.constant 0 : i32
    return %c0_i32, %arg1 : i32, i32
  }
  func.func @transform_3(%arg0: i32, %arg1: i32, %arg2: i32) -> (i32, i32) {
    %c0_i32 = arith.constant 0 : i32
    return %arg0, %arg1 : i32, i32
  }
}

</mosaic_0001>

<bundles_post_ra>
// kernel: linear_tanh.1
= control target key start
LH: loop header
LB: loop body
LE: loop exit
PB: predicated region body
PF: predicated region fallthrough
CT: control target
= control target key end

     0   :  { %s811_s1 = inlined_call_operand.vmem [shape: f32[256,128], index: 1, kind: input, shape index: {}]   ;;  %s812_s0 = inlined_call_operand.vmem [shape: f32[128,256], index: 0, kind: input, shape index: {}]   ;;  %s813_s2 = inlined_call_operand.vmem [shape: f32[1,128], index: 2, kind: input, shape index: {}]   ;;  %s814_s3 = inlined_call_operand.vmem [shape: f32[128,128], index: 3, kind: output, shape index: {}]  }
   0x1   :  { %v98_v0 = vld [vmem:[%s811_s1 + $0x80] sm:$0xff]  ;;  %v99_v1 = vld [vmem:[%s811_s1 + $0x88] sm:$0xff]  ;;  %v100_v5 = vld [vmem:[%s811_s1 + $0x90] sm:$0xff] }
   0x2   :  { %v82_v2 = vld [vmem:[%s811_s1] sm:$0xff]  ;;  %v450_v3 = vpack.c.bf16 %v99_v1, %v98_v0  ;;  %v83_v4 = vld [vmem:[%s811_s1 + $0x8] sm:$0xff]  ;;  %v101_v6 = vld [vmem:[%s811_s1 + $0x98] sm:$0xff] }
   0x3   :  { %v452_v7 = vpack.c.bf16 %v83_v4, %v82_v2  ;;  %v454_v8 = vpack.c.bf16 %v101_v6, %v100_v5  ;;  %v84_v9 = vld [vmem:[%s811_s1 + $0x10] sm:$0xff]  ;;  %v85_v10 = vld [vmem:[%s811_s1 + $0x18] sm:$0xff]  ;;  %v102_v11 = vld [vmem:[%s811_s1 + $0xa0] sm:$0xff] }
   0x4   :  { %451 = vmatprep.subr.bf16.mxu0 %v450_v3  ;;  %482 = vmatprep.subr.bf16.mxu1 %v450_v3  ;;  %v103_v12 = vld [vmem:[%s811_s1 + $0xa8] sm:$0xff]  ;;  %v456_v13 = vpack.c.bf16 %v85_v10, %v84_v9  ;;  %v86_v15 = vld [vmem:[%s811_s1 + $0x20] sm:$0xff]  ;;  %v104_v17 = vld [vmem:[%s811_s1 + $0xb0] sm:$0xff] }
   0x5   :  { %453 = vmatpush3.bf16.msra.mxu0 %v452_v7  ;;  %490 = vmatpush3.bf16.msra.mxu1 %v452_v7  ;;  %v458_v14 = vpack.c.bf16 %v103_v12, %v102_v11  ;;  %v87_v16 = vld [vmem:[%s811_s1 + $0x28] sm:$0xff]  ;;  %v105_v18 = vld [vmem:[%s811_s1 + $0xb8] sm:$0xff]  ;;  %v88_v21 = vld [vmem:[%s811_s1 + $0x30] sm:$0xff] }
   0x6   :  { %455 = vmatprep.subr.bf16.mxu0 %v454_v8  ;;  %483 = vmatprep.subr.bf16.mxu1 %v454_v8  ;;  %v460_v19 = vpack.c.bf16 %v87_v16, %v86_v15  ;;  %v462_v20 = vpack.c.bf16 %v105_v18, %v104_v17  ;;  %v89_v22 = vld [vmem:[%s811_s1 + $0x38] sm:$0xff]  ;;  %v106_v23 = vld [vmem:[%s811_s1 + $0xc0] sm:$0xff]  ;;  %v107_v24 = vld [vmem:[%s811_s1 + $0xc8] sm:$0xff] }
   0x7   :  { %v51_v25 = vld [vmem:[%s812_s0 + $0x8] sm:$0xff]  ;;  %v464_v27 = vpack.c.bf16 %v89_v22, %v88_v21  ;;  %v466_v28 = vpack.c.bf16 %v107_v24, %v106_v23  ;;  %v90_v29 = vld [vmem:[%s811_s1 + $0x40] sm:$0xff]  ;;  %v108_v31 = vld [vmem:[%s811_s1 + $0xd0] sm:$0xff] }
   0x8   :  { %178 = vmatprep.mubr.f32.mxu0 %v51_v25  ;;  %v67_v26 = vld [vmem:[%s812_s0 + $0x88] sm:$0xff]  ;;  %v109_v32 = vld [vmem:[%s811_s1 + $0xd8] sm:$0xff]  ;;  %v92_v35 = vld [vmem:[%s811_s1 + $0x50] sm:$0xff] }
   0x9   :  { %457 = vmatpush3.bf16.msra.mxu0 %v456_v13  ;;  %491 = vmatpush3.bf16.msra.mxu1 %v456_v13  ;;  %v91_v30 = vld [vmem:[%s811_s1 + $0x48] sm:$0xff]  ;;  %v470_v34 = vpack.c.bf16 %v109_v32, %v108_v31  ;;  %v93_v36 = vld [vmem:[%s811_s1 + $0x58] sm:$0xff]  ;;  %v110_v37 = vld [vmem:[%s811_s1 + $0xe0] sm:$0xff] }
   0xa   :  { %459 = vmatprep.subr.bf16.mxu0 %v458_v14  ;;  %484 = vmatprep.subr.bf16.mxu1 %v458_v14  ;;  %v468_v33 = vpack.c.bf16 %v91_v30, %v90_v29  ;;  %v111_v38 = vld [vmem:[%s811_s1 + $0xe8] sm:$0xff]  ;;  %v472_v39 = vpack.c.bf16 %v93_v36, %v92_v35  ;;  %v94_v41 = vld [vmem:[%s811_s1 + $0x60] sm:$0xff]  ;;  %v112_v43 = vld [vmem:[%s811_s1 + $0xf0] sm:$0xff] }
   0xb   :  { %218 = vmatprep.mubr.f32.mxu1 %v67_v26  ;;  %v474_v40 = vpack.c.bf16 %v111_v38, %v110_v37  ;;  %v95_v42 = vld [vmem:[%s811_s1 + $0x68] sm:$0xff]  ;;  %v113_v44 = vld [vmem:[%s811_s1 + $0xf8] sm:$0xff]  ;;  %v96_v47 = vld [vmem:[%s811_s1 + $0x70] sm:$0xff] }
   0xc   :  { %v476_v45 = vpack.c.bf16 %v95_v42, %v94_v41  ;;  %v478_v46 = vpack.c.bf16 %v113_v44, %v112_v43  ;;  %v97_v48 = vld [vmem:[%s811_s1 + $0x78] sm:$0xff]  ;;  %v50_v50 = vld [vmem:[%s812_s0] sm:$0xff]  ;;  %v52_v54 = vld [vmem:[%s812_s0 + $0x10] sm:$0xff] }
   0xd   :  { %461 = vmatpush3.bf16.msra.mxu0 %v460_v19  ;;  %492 = vmatpush3.bf16.msra.mxu1 %v460_v19  ;;  %v480_v49 = vpack.c.bf16 %v97_v48, %v96_v47  ;;  %v66_v51 = vld [vmem:[%s812_s0 + $0x80] sm:$0xff]  ;;  %v53_v52 = vld [vmem:[%s812_s0 + $0x18] sm:$0xff]  ;;  %v68_v55 = vld [vmem:[%s812_s0 + $0x90] sm:$0xff] }
   0xe   :  { %463 = vmatprep.subr.bf16.mxu0 %v462_v20  ;;  %485 = vmatprep.subr.bf16.mxu1 %v462_v20  ;;  %v69_v53 = vld [vmem:[%s812_s0 + $0x98] sm:$0xff]  ;;  %v55_v56 = vld [vmem:[%s812_s0 + $0x28] sm:$0xff]  ;;  %v54_v58 = vld [vmem:[%s812_s0 + $0x20] sm:$0xff] }
   0xf   :  { %v71_v57 = vld [vmem:[%s812_s0 + $0xa8] sm:$0xff]  ;;  %v70_v59 = vld [vmem:[%s812_s0 + $0xa0] sm:$0xff]  ;;  %v57_v60 = vld [vmem:[%s812_s0 + $0x38] sm:$0xff] }
  0x10   :  { %v73_v61 = vld [vmem:[%s812_s0 + $0xb8] sm:$0xff]  ;;  %v56_v62 = vld [vmem:[%s812_s0 + $0x30] sm:$0xff]  ;;  %v59_v0 = vld [vmem:[%s812_s0 + $0x48] sm:$0xff] }
  0x11   :  { %465 = vmatpush3.bf16.msra.mxu0 %v464_v27  ;;  %493 = vmatpush3.bf16.msra.mxu1 %v464_v27  ;;  %v72_v63 = vld [vmem:[%s812_s0 + $0xb0] sm:$0xff]  ;;  %v75_v1 = vld [vmem:[%s812_s0 + $0xc8] sm:$0xff]  ;;  %v58_v2 = vld [vmem:[%s812_s0 + $0x40] sm:$0xff] }
  0x12   :  { %467 = vmatprep.subr.bf16.mxu0 %v466_v28  ;;  %486 = vmatprep.subr.bf16.mxu1 %v466_v28  ;;  %v74_v3 = vld [vmem:[%s812_s0 + $0xc0] sm:$0xff]  ;;  %v61_v4 = vld [vmem:[%s812_s0 + $0x58] sm:$0xff]  ;;  %v60_v6 = vld [vmem:[%s812_s0 + $0x50] sm:$0xff] }
  0x13   :  { %v77_v5 = vld [vmem:[%s812_s0 + $0xd8] sm:$0xff]  ;;  %v76_v7 = vld [vmem:[%s812_s0 + $0xd0] sm:$0xff]  ;;  %v63_v8 = vld [vmem:[%s812_s0 + $0x68] sm:$0xff] }
  0x14   :  { %v79_v9 = vld [vmem:[%s812_s0 + $0xe8] sm:$0xff]  ;;  %v62_v10 = vld [vmem:[%s812_s0 + $0x60] sm:$0xff]  ;;  %v65_v12 = vld [vmem:[%s812_s0 + $0x78] sm:$0xff] }
  0x15   :  { %469 = vmatpush3.bf16.msra.mxu0 %v468_v33  ;;  %494 = vmatpush3.bf16.msra.mxu1 %v468_v33  ;;  %v78_v11 = vld [vmem:[%s812_s0 + $0xe0] sm:$0xff]  ;;  %v81_v13 = vld [vmem:[%s812_s0 + $0xf8] sm:$0xff]  ;;  %v64_v14 = vld [vmem:[%s812_s0 + $0x70] sm:$0xff] }
  0x16   :  { %471 = vmatprep.subr.bf16.mxu0 %v470_v34  ;;  %487 = vmatprep.subr.bf16.mxu1 %v470_v34  ;;  %v80_v15 = vld [vmem:[%s812_s0 + $0xf0] sm:$0xff]  ;;  %v745_v19 = vld [vmem:[%s813_s2] ss:$0 sm:$0xff] }
  0x19   :  { %473 = vmatpush3.bf16.msra.mxu0 %v472_v39  ;;  %495 = vmatpush3.bf16.msra.mxu1 %v472_v39 }
  0x1a   :  { %475 = vmatprep.subr.bf16.mxu0 %v474_v40  ;;  %488 = vmatprep.subr.bf16.mxu1 %v474_v40 }
  0x1d   :  { %477 = vmatpush3.bf16.msra.mxu0 %v476_v45  ;;  %496 = vmatpush3.bf16.msra.mxu1 %v476_v45 }
  0x1e   :  { %479 = vmatprep.subr.bf16.mxu0 %v478_v46  ;;  %489 = vmatprep.subr.bf16.mxu1 %v478_v46 }
  0x21   :  { %481 = vmatpush3.bf16.msra.mxu0 %v480_v49  ;;  %497 = vmatpush3.bf16.msra.mxu1 %v480_v49 }
  0x24   :  { %179 = vmatmul.mubr.f32.vlgmr.msra.gmra.mrb[0].mxu0 %v50_v50  ;;  %219 = vmatmul.mubr.f32.vlgmr.msra.gmra.mrb[0].mxu1 %v66_v51 }
  0x25   :  { %183 = vmatprep.mubr.f32.mxu0 %v53_v52  ;;  %223 = vmatprep.mubr.f32.mxu1 %v69_v53 }
  0x28   :  { %184 = vmatmul.mubr.f32.gmra.mrb[2].mxu0 %v52_v54  ;;  %224 = vmatmul.mubr.f32.gmra.mrb[2].mxu1 %v68_v55 }
  0x29   :  { %188 = vmatprep.mubr.f32.mxu0 %v55_v56  ;;  %228 = vmatprep.mubr.f32.mxu1 %v71_v57 }
  0x2c   :  { %189 = vmatmul.mubr.f32.gmra.mrb[4].mxu0 %v54_v58  ;;  %229 = vmatmul.mubr.f32.gmra.mrb[4].mxu1 %v70_v59 }
  0x2d   :  { %193 = vmatprep.mubr.f32.mxu0 %v57_v60  ;;  %233 = vmatprep.mubr.f32.mxu1 %v73_v61 }
  0x30   :  { %194 = vmatmul.mubr.f32.gmra.mrb[6].mxu0 %v56_v62  ;;  %234 = vmatmul.mubr.f32.gmra.mrb[6].mxu1 %v72_v63 }
  0x31   :  { %198 = vmatprep.mubr.f32.mxu0 %v59_v0  ;;  %238 = vmatprep.mubr.f32.mxu1 %v75_v1 }
  0x34   :  { %199 = vmatmul.mubr.f32.gmra.mrb[8].mxu0 %v58_v2  ;;  %239 = vmatmul.mubr.f32.gmra.mrb[8].mxu1 %v74_v3 }
  0x35   :  { %203 = vmatprep.mubr.f32.mxu0 %v61_v4  ;;  %243 = vmatprep.mubr.f32.mxu1 %v77_v5 }
  0x38   :  { %204 = vmatmul.mubr.f32.gmra.mrb[10].mxu0 %v60_v6  ;;  %244 = vmatmul.mubr.f32.gmra.mrb[10].mxu1 %v76_v7 }
  0x39   :  { %208 = vmatprep.mubr.f32.mxu0 %v63_v8  ;;  %248 = vmatprep.mubr.f32.mxu1 %v79_v9 }
  0x3c   :  { %209 = vmatmul.mubr.f32.gmra.mrb[12].mxu0 %v62_v10  ;;  %249 = vmatmul.mubr.f32.gmra.mrb[12].mxu1 %v78_v11 }
  0x3d   :  { %213 = vmatprep.mubr.f32.mxu0 %v65_v12  ;;  %253 = vmatprep.mubr.f32.mxu1 %v81_v13 }
  0x40   :  { %214 = vmatmul.mubr.f32.gmra.mrb[14].mxu0 %v64_v14  ;;  %254 = vmatmul.mubr.f32.gmra.mrb[14].mxu1 %v80_v15 }
  0xf7   :  { %v402_v16 = vpop.f32.mrb[0].mxu0  ;;  %v426_v17 = vpop.f32.mrb[0].mxu1 }
  0xf8   :  { %v403_v18 = vpop.f32.mrb[1].mxu0  ;;  %v427_v20 = vpop.f32.mrb[1].mxu1 }
  0xf9   :  { %v404_v21 = vadd.f32 %v403_v18, %v402_v16  ;;  %v428_v22 = vadd.f32 %v427_v20, %v426_v17 }
  0xfb   :  { %v317_v23 = vadd.f32 %v404_v21, %v745_v19  ;;  %v325_v24 = vadd.f32 %v428_v22, %v745_v19  ;;  %v405_v25 = vpop.f32.mrb[2].mxu0  ;;  %v429_v26 = vpop.f32.mrb[2].mxu1 }
  0xfc   :  { %v406_v27 = vpop.f32.mrb[3].mxu0  ;;  %v430_v28 = vpop.f32.mrb[3].mxu1 }
  0xfd   :  { %498 = vtanh.f32 %v317_v23  ;;  %v407_v29 = vadd.f32 %v406_v27, %v405_v25  ;;  %v431_v30 = vadd.f32 %v430_v28, %v429_v26 }
  0xfe   :  { %500 = vtanh.f32 %v325_v24 }
  0xff   :  { %v318_v31 = vadd.f32 %v407_v29, %v745_v19  ;;  %v326_v32 = vadd.f32 %v431_v30, %v745_v19  ;;  %v408_v33 = vpop.f32.mrb[4].mxu0  ;;  %v432_v34 = vpop.f32.mrb[4].mxu1 }
 0x100   :  { %v409_v35 = vpop.f32.mrb[5].mxu0  ;;  %v433_v36 = vpop.f32.mrb[5].mxu1 }
 0x101   :  { %502 = vtanh.f32 %v318_v31  ;;  %v410_v37 = vadd.f32 %v409_v35, %v408_v33  ;;  %v434_v38 = vadd.f32 %v433_v36, %v432_v34 }
 0x102   :  { %504 = vtanh.f32 %v326_v32 }
 0x103   :  { %v319_v39 = vadd.f32 %v410_v37, %v745_v19  ;;  %v327_v40 = vadd.f32 %v434_v38, %v745_v19  ;;  %v411_v41 = vpop.f32.mrb[6].mxu0  ;;  %v435_v42 = vpop.f32.mrb[6].mxu1 }
 0x104   :  { %v412_v43 = vpop.f32.mrb[7].mxu0  ;;  %v436_v44 = vpop.f32.mrb[7].mxu1 }
 0x105   :  { %506 = vtanh.f32 %v319_v39  ;;  %v413_v45 = vadd.f32 %v412_v43, %v411_v41  ;;  %v437_v46 = vadd.f32 %v436_v44, %v435_v42 }
 0x106   :  { %508 = vtanh.f32 %v327_v40 }
 0x107   :  { %v499_v47 = vpop.eup %498  ;;  %v320_v48 = vadd.f32 %v413_v45, %v745_v19  ;;  %v328_v49 = vadd.f32 %v437_v46, %v745_v19  ;;  %v414_v50 = vpop.f32.mrb[8].mxu0 }
 0x108   :  { %v438_v51 = vpop.f32.mrb[8].mxu1  ;;  %v501_v52 = vpop.eup %500  ;;  %349 = vst [vmem:[%s814_s3] sm:$0xff] %v499_v47 }
 0x109   :  { %v415_v53 = vpop.f32.mrb[9].mxu0  ;;  %v439_v54 = vpop.f32.mrb[9].mxu1  ;;  %357 = vst [vmem:[%s814_s3 + $0x40] sm:$0xff] %v501_v52  ;;  %510 = vtanh.f32 %v320_v48 }
 0x10a   :  { %v416_v55 = vadd.f32 %v415_v53, %v414_v50  ;;  %v440_v56 = vadd.f32 %v439_v54, %v438_v51  ;;  %512 = vtanh.f32 %v328_v49 }
 0x10b   :  { %v503_v57 = vpop.eup %502  ;;  %v417_v60 = vpop.f32.mrb[10].mxu0 }
 0x10c   :  { %v321_v58 = vadd.f32 %v416_v55, %v745_v19  ;;  %v329_v59 = vadd.f32 %v440_v56, %v745_v19  ;;  %v441_v61 = vpop.f32.mrb[10].mxu1  ;;  %v505_v62 = vpop.eup %504  ;;  %350 = vst [vmem:[%s814_s3 + $0x8] sm:$0xff] %v503_v57 }
 0x10d   :  { %v418_v63 = vpop.f32.mrb[11].mxu0  ;;  %v442_v0 = vpop.f32.mrb[11].mxu1  ;;  %358 = vst [vmem:[%s814_s3 + $0x48] sm:$0xff] %v505_v62 }
 0x10e   :  { %514 = vtanh.f32 %v321_v58  ;;  %v419_v1 = vadd.f32 %v418_v63, %v417_v60  ;;  %v443_v2 = vadd.f32 %v442_v0, %v441_v61 }
 0x10f   :  { %516 = vtanh.f32 %v329_v59  ;;  %v507_v3 = vpop.eup %506  ;;  %v420_v6 = vpop.f32.mrb[12].mxu0 }
 0x110   :  { %v322_v4 = vadd.f32 %v419_v1, %v745_v19  ;;  %v330_v5 = vadd.f32 %v443_v2, %v745_v19  ;;  %v444_v7 = vpop.f32.mrb[12].mxu1  ;;  %v509_v8 = vpop.eup %508  ;;  %351 = vst [vmem:[%s814_s3 + $0x10] sm:$0xff] %v507_v3 }
 0x111   :  { %v421_v9 = vpop.f32.mrb[13].mxu0  ;;  %v445_v10 = vpop.f32.mrb[13].mxu1  ;;  %359 = vst [vmem:[%s814_s3 + $0x50] sm:$0xff] %v509_v8 }
 0x112   :  { %518 = vtanh.f32 %v322_v4  ;;  %v422_v11 = vadd.f32 %v421_v9, %v420_v6  ;;  %v446_v12 = vadd.f32 %v445_v10, %v444_v7 }
 0x113   :  { %520 = vtanh.f32 %v330_v5  ;;  %v511_v13 = vpop.eup %510  ;;  %v423_v16 = vpop.f32.mrb[14].mxu0 }
 0x114   :  { %v323_v14 = vadd.f32 %v422_v11, %v745_v19  ;;  %v331_v15 = vadd.f32 %v446_v12, %v745_v19  ;;  %v447_v17 = vpop.f32.mrb[14].mxu1  ;;  %v513_v18 = vpop.eup %512  ;;  %352 = vst [vmem:[%s814_s3 + $0x18] sm:$0xff] %v511_v13 }
 0x115   :  { %v424_v20 = vpop.f32.mrb[15].mxu0  ;;  %v448_v21 = vpop.f32.mrb[15].mxu1  ;;  %360 = vst [vmem:[%s814_s3 + $0x58] sm:$0xff] %v513_v18 }
 0x116   :  { %522 = vtanh.f32 %v323_v14  ;;  %v425_v22 = vadd.f32 %v424_v20, %v423_v16  ;;  %v449_v23 = vadd.f32 %v448_v21, %v447_v17 }
 0x117   :  { %524 = vtanh.f32 %v331_v15 }
 0x118   :  { %v515_v24 = vpop.eup %514  ;;  %v324_v25 = vadd.f32 %v425_v22, %v745_v19  ;;  %v332_v26 = vadd.f32 %v449_v23, %v745_v19 }
 0x119   :  { %v517_v27 = vpop.eup %516  ;;  %353 = vst [vmem:[%s814_s3 + $0x20] sm:$0xff] %v515_v24 }
 0x11a   :  { %361 = vst [vmem:[%s814_s3 + $0x60] sm:$0xff] %v517_v27  ;;  %526 = vtanh.f32 %v324_v25 }
 0x11b   :  { %528 = vtanh.f32 %v332_v26 }
 0x11c   :  { %v519_v28 = vpop.eup %518 }
 0x11d   :  { %v521_v29 = vpop.eup %520  ;;  %354 = vst [vmem:[%s814_s3 + $0x28] sm:$0xff] %v519_v28 }
 0x11e   :  { %362 = vst [vmem:[%s814_s3 + $0x68] sm:$0xff] %v521_v29 }
 0x120   :  { %v523_v19 = vpop.eup %522 }
 0x121   :  { %v525_v30 = vpop.eup %524  ;;  %355 = vst [vmem:[%s814_s3 + $0x30] sm:$0xff] %v523_v19 }
 0x122   :  { %363 = vst [vmem:[%s814_s3 + $0x70] sm:$0xff] %v525_v30 }
 0x124   :  { %v527_v31 = vpop.eup %526 }
 0x125   :  { %v529_v32 = vpop.eup %528  ;;  %356 = vst [vmem:[%s814_s3 + $0x38] sm:$0xff] %v527_v31 }
 0x126   :  { %364 = vst [vmem:[%s814_s3 + $0x78] sm:$0xff] %v529_v32 }

</bundles_post_ra>
